<compile_context>
chip_gen: v6e
topology: v6e:2x2x1
jax: 0.10.0
libtpu: 0.0.40
codegen_flags: <defaults>
</compile_context>

<pallas_src>
from functools import partial

import jax
import jax.numpy as jnp
from jax.experimental import pallas as pl
from jax.experimental.pallas import tpu as pltpu


def _round_up(x: int, m: int) -> int:
    return ((x + m - 1) // m) * m


def _moving_avg_kernel(
    x_ref,        # (L, C_t)      input tile: one batch element, one channel tile
    o_ref,        # (L_out, C_t)  output tile
    *scratch,     # optional (n_full, C_t) f32 scratch, only present when stride > 1
    kernel_size: int,
    stride: int,
    front_pad: int,
    seq_len: int,
    l_out: int,
    t0: int,      # first "interior" output row (sublane-aligned)
    n_int: int,   # number of interior output rows
):
    K = kernel_size
    s = stride
    fp = front_pad
    L = seq_len
    inv_k = 1.0 / K
    out_dtype = o_ref.dtype

    # ---- interior rows: every tap reads directly from x_ref (no padded copy) -----
    if n_int > 0:
        if s == 1:
            acc = None
            for k in range(K):
                tap = x_ref[pl.ds(t0 + k - fp, n_int), :].astype(jnp.float32)
                acc = tap if acc is None else acc + tap
            o_ref[pl.ds(t0, n_int), :] = (acc * inv_k).astype(out_dtype)
        else:
            # Contiguous full-resolution accumulation, then ONE strided downsample
            # read (instead of K strided reads).
            acc_ref = scratch[0]
            n_full = (n_int - 1) * s + 1
            acc = None
            for k in range(K):
                tap = x_ref[pl.ds(t0 * s + k - fp, n_full), :].astype(jnp.float32)
                acc = tap if acc is None else acc + tap
            acc_ref[pl.ds(0, n_full), :] = acc
            o_ref[pl.ds(t0, n_int), :] = (
                acc_ref[pl.ds(0, n_int, s), :] * inv_k
            ).astype(out_dtype)

    # ---- edge rows: windows that touch the replicate padding (tiny exact pass) ---
    edge_rows = list(range(t0)) + list(range(t0 + n_int, l_out))
    if edge_rows:
        x0 = x_ref[pl.ds(0, 1), :].astype(jnp.float32)        # replicated front row
        xl = x_ref[pl.ds(L - 1, 1), :].astype(jnp.float32)     # replicated end row
        for t in edge_rows:
            p_lo = t * s                                        # window start in x_pad
            c0 = max(0, min(K, fp - p_lo))                      # taps on front pad
            c1 = max(0, min(K, p_lo + K - fp - L))              # taps on end pad
            j0 = max(0, p_lo - fp)                              # first real x row
            cnt = K - c0 - c1                                   # real rows in window
            row = x_ref[pl.ds(j0, cnt), :].astype(jnp.float32).sum(
                axis=0, keepdims=True)
            if c0:
                row = row + c0 * x0
            if c1:
                row = row + c1 * xl
            o_ref[pl.ds(t, 1), :] = (row * inv_k).astype(out_dtype)


def _tpu_vmem_capacity() -> int:
    try:
        return int(pltpu.get_tpu_info().vmem_capacity_bytes)
    except Exception:
        return 64 * 1024 * 1024   # conservative default (v7x per-core VMEM)


def _pick_channel_tile(C: int, L: int, l_out: int, itemsize: int, stride: int,
                       batch: int, budget: int) -> int:
    """Largest lane-dense (multiple-of-128) channel tile that divides C and whose
    per-step footprint (2x in + 2x out + f32 temps) fits the budget, then shrunk
    (never below 128) until the grid has enough steps to pipeline."""
    if C % 128 != 0:
        # TODO(synk): lane-pack small-C inputs (fold batch into lanes or pad C to 128)
        # to avoid masked vst.msk partial stores; full-C block kept for correctness.
        return C

    def footprint(t):
        f32_tmp = l_out * t * 4 + (L * t * 4 if stride > 1 else 0)
        return (2 * L * t + 2 * l_out * t) * itemsize + f32_tmp

    cands = sorted(t for t in range(128, C + 1, 128) if C % t == 0)
    fitting = [t for t in cands if footprint(t) <= budget] or [cands[0]]
    idx = len(fitting) - 1
    min_steps = 8   # per-chip pipeline depth target (v7x splits these over 2 TCs)
    while idx > 0 and batch * (C // fitting[idx]) < min_steps:
        idx -= 1
    return fitting[idx]


def moving_avg1d(x: jax.Array, kernel_size: int, stride: int = 1) -> jax.Array:
    """x: (B, L, C) -> (B, L_out, C), replicate-padded moving average over L."""
    B, L, C = x.shape
    K = kernel_size
    s = stride
    end_pad = (K - 1) // 2
    front_pad = K - 1 - end_pad
    # AvgPool1d(padding=0) on the padded sequence: (L + K - 1 - K)//s + 1
    l_out = (L - 1) // s + 1

    cap = _tpu_vmem_capacity()
    vmem_limit = min(cap * 3 // 5, 96 * 1024 * 1024)          # ~38 MiB v7x, ~76 MiB v5e/v6e
    block_budget = min(cap // 4, 24 * 1024 * 1024)
    c_tile = _pick_channel_tile(C, L, l_out, x.dtype.itemsize, s, B, block_budget)
    n_c = pl.cdiv(C, c_tile)

    # Interior/edge split.  Rows [t0, t0+n_int) have windows fully inside x; the
    # remaining few rows touch the replicate padding.  t0 is rounded up to the
    # dtype's sublane packing so the big interior store is sublane-aligned.
    sub = max(1, (8 * 4) // x.dtype.itemsize)                 # 8 f32, 16 bf16, 32 int8
    e_f = -(-front_pad // s) if front_pad > 0 else 0          # ceil(fp / s)
    t_e0 = -(-(front_pad + L - K + 1) // s)                   # first row on end pad
    t_e0 = max(0, min(l_out, t_e0))
    t0 = min(_round_up(e_f, sub), t_e0, l_out)
    n_int = t_e0 - t0

    scratch_shapes = []
    if s > 1 and n_int > 0:
        n_full = (n_int - 1) * s + 1
        scratch_shapes.append(pltpu.VMEM((n_full, c_tile), jnp.float32))

    kernel = partial(
        _moving_avg_kernel,
        kernel_size=K, stride=s, front_pad=front_pad,
        seq_len=L, l_out=l_out, t0=t0, n_int=n_int,
    )

    # TODO(synk): for very long sequences add a time-tiled grid axis with a (K-1)-row
    # halo (manual async copies) so blocks stay small on v7x's 64 MiB VMEM and the
    # pipeline gains depth; typical trend-decomposition L fits comfortably.
    return pl.pallas_call(
        kernel,
        out_shape=jax.ShapeDtypeStruct((B, l_out, C), x.dtype),
        grid_spec=pltpu.PrefetchScalarGridSpec(
            num_scalar_prefetch=0,
            grid=(B, n_c),
            in_specs=[pl.BlockSpec((None, L, c_tile), lambda b, ci: (b, 0, ci))],
            out_specs=pl.BlockSpec((None, l_out, c_tile), lambda b, ci: (b, 0, ci)),
            scratch_shapes=scratch_shapes,
        ),
        compiler_params=pltpu.CompilerParams(
            dimension_semantics=("parallel", "parallel"),
            vmem_limit_bytes=vmem_limit,
        ),
    )(x)


def _reference(x, kernel_size, stride):
    end_pad = (kernel_size - 1) // 2
    front_pad = kernel_size - 1 - end_pad
    x = x.astype(jnp.float32)
    x_pad = jnp.concatenate(
        [jnp.repeat(x[:, 0:1, :], front_pad, axis=1),
         x,
         jnp.repeat(x[:, -1:, :], end_pad, axis=1)],
        axis=1,
    )
    l_out = (x_pad.shape[1] - kernel_size) // stride + 1
    return jnp.stack(
        [x_pad[:, t * stride:t * stride + kernel_size, :].mean(axis=1)
         for t in range(l_out)],
        axis=1,
    )


if __name__ == "__main__":
    key = jax.random.PRNGKey(0)
    k1, k2, k3 = jax.random.split(key, 3)

    # Case 1: lane-dense channels, odd kernel, stride 1.
    B, L, C = 2, 32, 128
    x = jax.random.normal(k1, (B, L, C), dtype=jnp.float32)
    out = jax.block_until_ready(moving_avg1d(x, kernel_size=5, stride=1))
    ref = _reference(x, 5, 1)
    assert out.shape == ref.shape, (out.shape, ref.shape)
    assert jnp.allclose(out, ref, atol=1e-5, rtol=1e-5)

    # Case 2: asymmetric padding (even kernel), stride > 1, C not a lane multiple.
    B2, L2, C2 = 2, 33, 32
    x2 = jax.random.normal(k2, (B2, L2, C2), dtype=jnp.float32)
    out2 = jax.block_until_ready(moving_avg1d(x2, kernel_size=6, stride=2))
    ref2 = _reference(x2, 6, 2)
    assert out2.shape == ref2.shape, (out2.shape, ref2.shape)
    assert jnp.allclose(out2, ref2, atol=1e-5, rtol=1e-5)

    # Case 3: bf16 input, typical trend-decomposition kernel size (exercises the
    # dtype-aware sublane alignment of the interior store).
    B3, L3, C3 = 2, 96, 128
    x3 = jax.random.normal(k3, (B3, L3, C3), dtype=jnp.float32).astype(jnp.bfloat16)
    out3 = jax.block_until_ready(moving_avg1d(x3, kernel_size=25, stride=1))
    ref3 = _reference(x3, 25, 1)
    assert out3.shape == ref3.shape, (out3.shape, ref3.shape)
    assert jnp.allclose(out3.astype(jnp.float32), ref3, atol=2e-2, rtol=2e-2)

    print("KERNEL_OK")
</pallas_src>

<mosaic_0001>
module attributes {stable_mosaic.version = 11 : i64} {
  func.func @_moving_avg_kernel(%arg0: i32, %arg1: i32, %arg2: memref<1x32x128xf32, #tpu.memory_space<vmem>>, %arg3: memref<1x32x128xf32, #tpu.memory_space<vmem>>) attributes {dimension_semantics = [#tpu.dimension_semantics<parallel>, #tpu.dimension_semantics<parallel>], iteration_bounds = array<i64: 2, 1>, scalar_prefetch = 0 : i64, scratch_operands = 0 : i64, tpu.core_type = #tpu.core_type<tc>, window_params = [{transform_indices = @transform_0, window_bounds = array<i64: 1, 32, 128>}, {transform_indices = @transform_1, window_bounds = array<i64: 1, 32, 128>}]} {
    %c0 = arith.constant 0 : index
    %c6 = arith.constant 6 : index
    %c0_0 = arith.constant 0 : index
    %0 = vector.load %arg2[%c0, %c6, %c0_0] : memref<1x32x128xf32, #tpu.memory_space<vmem>>, vector<1x22x128xf32>
    %1 = vector.shape_cast %0 : vector<1x22x128xf32> to vector<22x128xf32>
    %c0_1 = arith.constant 0 : index
    %c7 = arith.constant 7 : index
    %c0_2 = arith.constant 0 : index
    %2 = vector.load %arg2[%c0_1, %c7, %c0_2] : memref<1x32x128xf32, #tpu.memory_space<vmem>>, vector<1x22x128xf32>
    %3 = vector.shape_cast %2 : vector<1x22x128xf32> to vector<22x128xf32>
    %4 = arith.addf %1, %3 : vector<22x128xf32>
    %c0_3 = arith.constant 0 : index
    %c8 = arith.constant 8 : index
    %c0_4 = arith.constant 0 : index
    %5 = vector.load %arg2[%c0_3, %c8, %c0_4] : memref<1x32x128xf32, #tpu.memory_space<vmem>>, vector<1x22x128xf32>
    %6 = vector.shape_cast %5 : vector<1x22x128xf32> to vector<22x128xf32>
    %7 = arith.addf %4, %6 : vector<22x128xf32>
    %c0_5 = arith.constant 0 : index
    %c9 = arith.constant 9 : index
    %c0_6 = arith.constant 0 : index
    %8 = vector.load %arg2[%c0_5, %c9, %c0_6] : memref<1x32x128xf32, #tpu.memory_space<vmem>>, vector<1x22x128xf32>
    %9 = vector.shape_cast %8 : vector<1x22x128xf32> to vector<22x128xf32>
    %10 = arith.addf %7, %9 : vector<22x128xf32>
    %c0_7 = arith.constant 0 : index
    %c10 = arith.constant 10 : index
    %c0_8 = arith.constant 0 : index
    %11 = vector.load %arg2[%c0_7, %c10, %c0_8] : memref<1x32x128xf32, #tpu.memory_space<vmem>>, vector<1x22x128xf32>
    %12 = vector.shape_cast %11 : vector<1x22x128xf32> to vector<22x128xf32>
    %13 = arith.addf %10, %12 : vector<22x128xf32>
    %cst = arith.constant 2.000000e-01 : f32
    %14 = vector.broadcast %cst : f32 to vector<22x128xf32>
    %15 = arith.mulf %13, %14 : vector<22x128xf32>
    %c0_9 = arith.constant 0 : index
    %c8_10 = arith.constant 8 : index
    %c0_11 = arith.constant 0 : index
    %16 = vector.load %arg3[%c0_9, %c8_10, %c0_11] : memref<1x32x128xf32, #tpu.memory_space<vmem>>, vector<1x22x128xf32>
    %17 = vector.shape_cast %16 : vector<1x22x128xf32> to vector<22x128xf32>
    %18 = vector.shape_cast %15 : vector<22x128xf32> to vector<1x22x128xf32>
    tpu.vector_store %arg3[%c0_9, %c8_10, %c0_11], %18 {strides = array<i32>} : memref<1x32x128xf32, #tpu.memory_space<vmem>>, vector<1x22x128xf32>,
    %c0_12 = arith.constant 0 : index
    %c0_13 = arith.constant 0 : index
    %c0_14 = arith.constant 0 : index
    %19 = vector.load %arg2[%c0_12, %c0_13, %c0_14] : memref<1x32x128xf32, #tpu.memory_space<vmem>>, vector<1x1x128xf32>
    %20 = vector.shape_cast %19 : vector<1x1x128xf32> to vector<1x128xf32>
    %c0_15 = arith.constant 0 : index
    %c31 = arith.constant 31 : index
    %c0_16 = arith.constant 0 : index
    %21 = vector.load %arg2[%c0_15, %c31, %c0_16] : memref<1x32x128xf32, #tpu.memory_space<vmem>>, vector<1x1x128xf32>
    %22 = vector.shape_cast %21 : vector<1x1x128xf32> to vector<1x128xf32>
    %c0_17 = arith.constant 0 : index
    %c0_18 = arith.constant 0 : index
    %c0_19 = arith.constant 0 : index
    %23 = vector.load %arg2[%c0_17, %c0_18, %c0_19] : memref<1x32x128xf32, #tpu.memory_space<vmem>>, vector<1x3x128xf32>
    %24 = vector.shape_cast %23 : vector<1x3x128xf32> to vector<3x128xf32>
    %cst_20 = arith.constant dense<0.000000e+00> : vector<128xf32>
    %25 = vector.multi_reduction <add>, %24, %cst_20 [0] : vector<3x128xf32> to vector<128xf32>
    %26 = vector.shape_cast %25 : vector<128xf32> to vector<1x128xf32>
    %cst_21 = arith.constant 2.000000e+00 : f32
    %27 = vector.broadcast %cst_21 : f32 to vector<1x128xf32>
    %28 = arith.mulf %27, %20 : vector<1x128xf32>
    %29 = arith.addf %26, %28 : vector<1x128xf32>
    %cst_22 = arith.constant 2.000000e-01 : f32
    %30 = vector.broadcast %cst_22 : f32 to vector<1x128xf32>
    %31 = arith.mulf %29, %30 : vector<1x128xf32>
    %c0_23 = arith.constant 0 : index
    %c0_24 = arith.constant 0 : index
    %c0_25 = arith.constant 0 : index
    %32 = vector.load %arg3[%c0_23, %c0_24, %c0_25] : memref<1x32x128xf32, #tpu.memory_space<vmem>>, vector<1x1x128xf32>
    %33 = vector.shape_cast %32 : vector<1x1x128xf32> to vector<1x128xf32>
    %34 = vector.shape_cast %31 : vector<1x128xf32> to vector<1x1x128xf32>
    tpu.vector_store %arg3[%c0_23, %c0_24, %c0_25], %34 {strides = array<i32>} : memref<1x32x128xf32, #tpu.memory_space<vmem>>, vector<1x1x128xf32>,
    %c0_26 = arith.constant 0 : index
    %c0_27 = arith.constant 0 : index
    %c0_28 = arith.constant 0 : index
    %35 = vector.load %arg2[%c0_26, %c0_27, %c0_28] : memref<1x32x128xf32, #tpu.memory_space<vmem>>, vector<1x4x128xf32>
    %36 = vector.shape_cast %35 : vector<1x4x128xf32> to vector<4x128xf32>
    %cst_29 = arith.constant dense<0.000000e+00> : vector<128xf32>
    %37 = vector.multi_reduction <add>, %36, %cst_29 [0] : vector<4x128xf32> to vector<128xf32>
    %38 = vector.shape_cast %37 : vector<128xf32> to vector<1x128xf32>
    %cst_30 = arith.constant 1.000000e+00 : f32
    %39 = vector.broadcast %cst_30 : f32 to vector<1x128xf32>
    %40 = arith.mulf %39, %20 : vector<1x128xf32>
    %41 = arith.addf %38, %40 : vector<1x128xf32>
    %cst_31 = arith.constant 2.000000e-01 : f32
    %42 = vector.broadcast %cst_31 : f32 to vector<1x128xf32>
    %43 = arith.mulf %41, %42 : vector<1x128xf32>
    %c0_32 = arith.constant 0 : index
    %c1 = arith.constant 1 : index
    %c0_33 = arith.constant 0 : index
    %44 = vector.load %arg3[%c0_32, %c1, %c0_33] : memref<1x32x128xf32, #tpu.memory_space<vmem>>, vector<1x1x128xf32>
    %45 = vector.shape_cast %44 : vector<1x1x128xf32> to vector<1x128xf32>
    %46 = vector.shape_cast %43 : vector<1x128xf32> to vector<1x1x128xf32>
    tpu.vector_store %arg3[%c0_32, %c1, %c0_33], %46 {strides = array<i32>} : memref<1x32x128xf32, #tpu.memory_space<vmem>>, vector<1x1x128xf32>,
    %c0_34 = arith.constant 0 : index
    %c0_35 = arith.constant 0 : index
    %c0_36 = arith.constant 0 : index
    %47 = vector.load %arg2[%c0_34, %c0_35, %c0_36] : memref<1x32x128xf32, #tpu.memory_space<vmem>>, vector<1x5x128xf32>
    %48 = vector.shape_cast %47 : vector<1x5x128xf32> to vector<5x128xf32>
    %cst_37 = arith.constant dense<0.000000e+00> : vector<128xf32>
    %49 = vector.multi_reduction <add>, %48, %cst_37 [0] : vector<5x128xf32> to vector<128xf32>
    %50 = vector.shape_cast %49 : vector<128xf32> to vector<1x128xf32>
    %cst_38 = arith.constant 2.000000e-01 : f32
    %51 = vector.broadcast %cst_38 : f32 to vector<1x128xf32>
    %52 = arith.mulf %50, %51 : vector<1x128xf32>
    %c0_39 = arith.constant 0 : index
    %c2 = arith.constant 2 : index
    %c0_40 = arith.constant 0 : index
    %53 = vector.load %arg3[%c0_39, %c2, %c0_40] : memref<1x32x128xf32, #tpu.memory_space<vmem>>, vector<1x1x128xf32>
    %54 = vector.shape_cast %53 : vector<1x1x128xf32> to vector<1x128xf32>
    %55 = vector.shape_cast %52 : vector<1x128xf32> to vector<1x1x128xf32>
    tpu.vector_store %arg3[%c0_39, %c2, %c0_40], %55 {strides = array<i32>} : memref<1x32x128xf32, #tpu.memory_space<vmem>>, vector<1x1x128xf32>,
    %c0_41 = arith.constant 0 : index
    %c1_42 = arith.constant 1 : index
    %c0_43 = arith.constant 0 : index
    %56 = vector.load %arg2[%c0_41, %c1_42, %c0_43] : memref<1x32x128xf32, #tpu.memory_space<vmem>>, vector<1x5x128xf32>
    %57 = vector.shape_cast %56 : vector<1x5x128xf32> to vector<5x128xf32>
    %cst_44 = arith.constant dense<0.000000e+00> : vector<128xf32>
    %58 = vector.multi_reduction <add>, %57, %cst_44 [0] : vector<5x128xf32> to vector<128xf32>
    %59 = vector.shape_cast %58 : vector<128xf32> to vector<1x128xf32>
    %cst_45 = arith.constant 2.000000e-01 : f32
    %60 = vector.broadcast %cst_45 : f32 to vector<1x128xf32>
    %61 = arith.mulf %59, %60 : vector<1x128xf32>
    %c0_46 = arith.constant 0 : index
    %c3 = arith.constant 3 : index
    %c0_47 = arith.constant 0 : index
    %62 = vector.load %arg3[%c0_46, %c3, %c0_47] : memref<1x32x128xf32, #tpu.memory_space<vmem>>, vector<1x1x128xf32>
    %63 = vector.shape_cast %62 : vector<1x1x128xf32> to vector<1x128xf32>
    %64 = vector.shape_cast %61 : vector<1x128xf32> to vector<1x1x128xf32>
    tpu.vector_store %arg3[%c0_46, %c3, %c0_47], %64 {strides = array<i32>} : memref<1x32x128xf32, #tpu.memory_space<vmem>>, vector<1x1x128xf32>,
    %c0_48 = arith.constant 0 : index
    %c2_49 = arith.constant 2 : index
    %c0_50 = arith.constant 0 : index
    %65 = vector.load %arg2[%c0_48, %c2_49, %c0_50] : memref<1x32x128xf32, #tpu.memory_space<vmem>>, vector<1x5x128xf32>
    %66 = vector.shape_cast %65 : vector<1x5x128xf32> to vector<5x128xf32>
    %cst_51 = arith.constant dense<0.000000e+00> : vector<128xf32>
    %67 = vector.multi_reduction <add>, %66, %cst_51 [0] : vector<5x128xf32> to vector<128xf32>
    %68 = vector.shape_cast %67 : vector<128xf32> to vector<1x128xf32>
    %cst_52 = arith.constant 2.000000e-01 : f32
    %69 = vector.broadcast %cst_52 : f32 to vector<1x128xf32>
    %70 = arith.mulf %68, %69 : vector<1x128xf32>
    %c0_53 = arith.constant 0 : index
    %c4 = arith.constant 4 : index
    %c0_54 = arith.constant 0 : index
    %71 = vector.load %arg3[%c0_53, %c4, %c0_54] : memref<1x32x128xf32, #tpu.memory_space<vmem>>, vector<1x1x128xf32>
    %72 = vector.shape_cast %71 : vector<1x1x128xf32> to vector<1x128xf32>
    %73 = vector.shape_cast %70 : vector<1x128xf32> to vector<1x1x128xf32>
    tpu.vector_store %arg3[%c0_53, %c4, %c0_54], %73 {strides = array<i32>} : memref<1x32x128xf32, #tpu.memory_space<vmem>>, vector<1x1x128xf32>,
    %c0_55 = arith.constant 0 : index
    %c3_56 = arith.constant 3 : index
    %c0_57 = arith.constant 0 : index
    %74 = vector.load %arg2[%c0_55, %c3_56, %c0_57] : memref<1x32x128xf32, #tpu.memory_space<vmem>>, vector<1x5x128xf32>
    %75 = vector.shape_cast %74 : vector<1x5x128xf32> to vector<5x128xf32>
    %cst_58 = arith.constant dense<0.000000e+00> : vector<128xf32>
    %76 = vector.multi_reduction <add>, %75, %cst_58 [0] : vector<5x128xf32> to vector<128xf32>
    %77 = vector.shape_cast %76 : vector<128xf32> to vector<1x128xf32>
    %cst_59 = arith.constant 2.000000e-01 : f32
    %78 = vector.broadcast %cst_59 : f32 to vector<1x128xf32>
    %79 = arith.mulf %77, %78 : vector<1x128xf32>
    %c0_60 = arith.constant 0 : index
    %c5 = arith.constant 5 : index
    %c0_61 = arith.constant 0 : index
    %80 = vector.load %arg3[%c0_60, %c5, %c0_61] : memref<1x32x128xf32, #tpu.memory_space<vmem>>, vector<1x1x128xf32>
    %81 = vector.shape_cast %80 : vector<1x1x128xf32> to vector<1x128xf32>
    %82 = vector.shape_cast %79 : vector<1x128xf32> to vector<1x1x128xf32>
    tpu.vector_store %arg3[%c0_60, %c5, %c0_61], %82 {strides = array<i32>} : memref<1x32x128xf32, #tpu.memory_space<vmem>>, vector<1x1x128xf32>,
    %c0_62 = arith.constant 0 : index
    %c4_63 = arith.constant 4 : index
    %c0_64 = arith.constant 0 : index
    %83 = vector.load %arg2[%c0_62, %c4_63, %c0_64] : memref<1x32x128xf32, #tpu.memory_space<vmem>>, vector<1x5x128xf32>
    %84 = vector.shape_cast %83 : vector<1x5x128xf32> to vector<5x128xf32>
    %cst_65 = arith.constant dense<0.000000e+00> : vector<128xf32>
    %85 = vector.multi_reduction <add>, %84, %cst_65 [0] : vector<5x128xf32> to vector<128xf32>
    %86 = vector.shape_cast %85 : vector<128xf32> to vector<1x128xf32>
    %cst_66 = arith.constant 2.000000e-01 : f32
    %87 = vector.broadcast %cst_66 : f32 to vector<1x128xf32>
    %88 = arith.mulf %86, %87 : vector<1x128xf32>
    %c0_67 = arith.constant 0 : index
    %c6_68 = arith.constant 6 : index
    %c0_69 = arith.constant 0 : index
    %89 = vector.load %arg3[%c0_67, %c6_68, %c0_69] : memref<1x32x128xf32, #tpu.memory_space<vmem>>, vector<1x1x128xf32>
    %90 = vector.shape_cast %89 : vector<1x1x128xf32> to vector<1x128xf32>
    %91 = vector.shape_cast %88 : vector<1x128xf32> to vector<1x1x128xf32>
    tpu.vector_store %arg3[%c0_67, %c6_68, %c0_69], %91 {strides = array<i32>} : memref<1x32x128xf32, #tpu.memory_space<vmem>>, vector<1x1x128xf32>,
    %c0_70 = arith.constant 0 : index
    %c5_71 = arith.constant 5 : index
    %c0_72 = arith.constant 0 : index
    %92 = vector.load %arg2[%c0_70, %c5_71, %c0_72] : memref<1x32x128xf32, #tpu.memory_space<vmem>>, vector<1x5x128xf32>
    %93 = vector.shape_cast %92 : vector<1x5x128xf32> to vector<5x128xf32>
    %cst_73 = arith.constant dense<0.000000e+00> : vector<128xf32>
    %94 = vector.multi_reduction <add>, %93, %cst_73 [0] : vector<5x128xf32> to vector<128xf32>
    %95 = vector.shape_cast %94 : vector<128xf32> to vector<1x128xf32>
    %cst_74 = arith.constant 2.000000e-01 : f32
    %96 = vector.broadcast %cst_74 : f32 to vector<1x128xf32>
    %97 = arith.mulf %95, %96 : vector<1x128xf32>
    %c0_75 = arith.constant 0 : index
    %c7_76 = arith.constant 7 : index
    %c0_77 = arith.constant 0 : index
    %98 = vector.load %arg3[%c0_75, %c7_76, %c0_77] : memref<1x32x128xf32, #tpu.memory_space<vmem>>, vector<1x1x128xf32>
    %99 = vector.shape_cast %98 : vector<1x1x128xf32> to vector<1x128xf32>
    %100 = vector.shape_cast %97 : vector<1x128xf32> to vector<1x1x128xf32>
    tpu.vector_store %arg3[%c0_75, %c7_76, %c0_77], %100 {strides = array<i32>} : memref<1x32x128xf32, #tpu.memory_space<vmem>>, vector<1x1x128xf32>,
    %c0_78 = arith.constant 0 : index
    %c28 = arith.constant 28 : index
    %c0_79 = arith.constant 0 : index
    %101 = vector.load %arg2[%c0_78, %c28, %c0_79] : memref<1x32x128xf32, #tpu.memory_space<vmem>>, vector<1x4x128xf32>
    %102 = vector.shape_cast %101 : vector<1x4x128xf32> to vector<4x128xf32>
    %cst_80 = arith.constant dense<0.000000e+00> : vector<128xf32>
    %103 = vector.multi_reduction <add>, %102, %cst_80 [0] : vector<4x128xf32> to vector<128xf32>
    %104 = vector.shape_cast %103 : vector<128xf32> to vector<1x128xf32>
    %cst_81 = arith.constant 1.000000e+00 : f32
    %105 = vector.broadcast %cst_81 : f32 to vector<1x128xf32>
    %106 = arith.mulf %105, %22 : vector<1x128xf32>
    %107 = arith.addf %104, %106 : vector<1x128xf32>
    %cst_82 = arith.constant 2.000000e-01 : f32
    %108 = vector.broadcast %cst_82 : f32 to vector<1x128xf32>
    %109 = arith.mulf %107, %108 : vector<1x128xf32>
    %c0_83 = arith.constant 0 : index
    %c30 = arith.constant 30 : index
    %c0_84 = arith.constant 0 : index
    %110 = vector.load %arg3[%c0_83, %c30, %c0_84] : memref<1x32x128xf32, #tpu.memory_space<vmem>>, vector<1x1x128xf32>
    %111 = vector.shape_cast %110 : vector<1x1x128xf32> to vector<1x128xf32>
    %112 = vector.shape_cast %109 : vector<1x128xf32> to vector<1x1x128xf32>
    tpu.vector_store %arg3[%c0_83, %c30, %c0_84], %112 {strides = array<i32>} : memref<1x32x128xf32, #tpu.memory_space<vmem>>, vector<1x1x128xf32>,
    %c0_85 = arith.constant 0 : index
    %c29 = arith.constant 29 : index
    %c0_86 = arith.constant 0 : index
    %113 = vector.load %arg2[%c0_85, %c29, %c0_86] : memref<1x32x128xf32, #tpu.memory_space<vmem>>, vector<1x3x128xf32>
    %114 = vector.shape_cast %113 : vector<1x3x128xf32> to vector<3x128xf32>
    %cst_87 = arith.constant dense<0.000000e+00> : vector<128xf32>
    %115 = vector.multi_reduction <add>, %114, %cst_87 [0] : vector<3x128xf32> to vector<128xf32>
    %116 = vector.shape_cast %115 : vector<128xf32> to vector<1x128xf32>
    %cst_88 = arith.constant 2.000000e+00 : f32
    %117 = vector.broadcast %cst_88 : f32 to vector<1x128xf32>
    %118 = arith.mulf %117, %22 : vector<1x128xf32>
    %119 = arith.addf %116, %118 : vector<1x128xf32>
    %cst_89 = arith.constant 2.000000e-01 : f32
    %120 = vector.broadcast %cst_89 : f32 to vector<1x128xf32>
    %121 = arith.mulf %119, %120 : vector<1x128xf32>
    %c0_90 = arith.constant 0 : index
    %c31_91 = arith.constant 31 : index
    %c0_92 = arith.constant 0 : index
    %122 = vector.load %arg3[%c0_90, %c31_91, %c0_92] : memref<1x32x128xf32, #tpu.memory_space<vmem>>, vector<1x1x128xf32>
    %123 = vector.shape_cast %122 : vector<1x1x128xf32> to vector<1x128xf32>
    %124 = vector.shape_cast %121 : vector<1x128xf32> to vector<1x1x128xf32>
    tpu.vector_store %arg3[%c0_90, %c31_91, %c0_92], %124 {strides = array<i32>} : memref<1x32x128xf32, #tpu.memory_space<vmem>>, vector<1x1x128xf32>,
    return
  }
  func.func @transform_0(%arg0: i32, %arg1: i32) -> (i32, i32, i32) {
    %c0_i32 = arith.constant 0 : i32
    %c0_i32_0 = arith.constant 0 : i32
    return %arg0, %c0_i32, %arg1 : i32, i32, i32
  }
  func.func @transform_1(%arg0: i32, %arg1: i32) -> (i32, i32, i32) {
    %c0_i32 = arith.constant 0 : i32
    %c0_i32_0 = arith.constant 0 : i32
    return %arg0, %c0_i32, %arg1 : i32, i32, i32
  }
}

</mosaic_0001>

<bundles_post_ra>
// kernel: tpu_custom_call.1
= control target key start
LH: loop header
LB: loop body
LE: loop exit
PB: predicated region body
PF: predicated region fallthrough
CT: control target
= control target key end

     0   :  { %6 = vsyncpa [#allocation3], 0  ;;  %s814_s0 = inlined_call_operand.hbm [shape: f32[2,32,128], index: 0, kind: input, shape index: {}]   ;;  %s815_s1 = inlined_call_operand.hbm [shape: f32[2,32,128], index: 1, kind: output, shape index: {}]  }
   0x1   :  { %8 = vsyncpa [#allocation3 + $0x1], 0 }
   0x2   :  { %9 = vsyncpa [#allocation4], 0 }
   0x3   :  { %11 = vsyncpa [#allocation4 + $0x1], 0  ;;  %s605_s6 = smov 0   ;;  %s607_s7 = smov 0  }
   0x4   :  { %s609_s8 = smov 0   ;;  %s611_s9 = smov 0  }
   0x5   :  { %s613_s10 = smov 0   ;;  %s615_s11 = smov 0  }
   0x6 LB: > { %s396_s12 = sadd.s32 4294967295, %s587_s11   ;;  %s397_s13 = sadd.s32 4294967294, %s587_s11   ;;  %s587_s11 = sphi %s615_s11, %s17_s11   ;;  %s583_s10 = sphi %s613_s10, %s826_s10   ;;  %s579_s9 = sphi %s611_s9, %s825_s9   ;;  %s575_s8 = sphi %s609_s8, %s824_s8   ;;  %s571_s7 = sphi %s607_s7, %s823_s7   ;;  %s567_s6 = sphi %s605_s6, %s822_s6  }
   0x7   : > { %s29_s14 = sadd.s32 1, %s583_s10  ;;  %s38_s15 = sadd.s32 1, %s575_s8 }
   0x8   : > { %p31_p0 = scmp.ge.s32.totalorder %s29_s14, 2  ;;  %p45_p1 = scmp.ne.s32.totalorder %s575_s8, %s571_s7 }
   0x9   : > { %p46_p2 = scmp.eq.s32.totalorder %s587_s11, 0  ;;  %p51_p3 = scmp.ne.s32.totalorder %s571_s7, %s567_s6 }
   0xa   : > { %s828_s14 = smov (%p31_p0, %s29_s14), 0  ;;  %p52_p5 = scmp.eq.s32.totalorder %s396_s12, 0 }
   0xb   : > { %p646_p4 = por %p46_p2, %p45_p1  ;;  %s33_s17 = ssub.s32 %s583_s10, %s828_s14 }
   0xc   : > { %p77_p6 = scmp.eq.s32.totalorder %s396_s12, 1  ;;  %p36_p7 = scmp.eq.s32.totalorder %s33_s17, 0 }
   0xd   : > { %p652_p8 = por %p52_p5, %p51_p3  ;;  %p83_p10 = scmp.eq.s32.totalorder %s397_s13, 1 }
   0xe   : > { %p656_p9 = por %p77_p6, %p45_p1  ;;  %p425_p13 = scmp.lt.s32.totalorder %s587_s11, 2 }
   0xf   : > { %s661_s20 = scalar_select %p36_p7, %s575_s8, %s38_s15  }
  0x10   : > { %p663_p11 = por %p83_p10, %p51_p3  ;;  %s103_s22 = sand.u32 1, %s575_s8  }
  0x11   : > { %s400_s23 = sshll.u32 %s103_s22, 5  ;;  %s411_s24 = sshll.u32 %s583_s10, 9 }
  0x12   : > { %s114_s27 = scalar_lea.hbm %s814_s0, %s411_s24  ;;  %s107_s28 = scalar_lea.vmem [#allocation2], %s400_s23 }
  0x13   : > { %s115_s29 = sshll.u32 %s107_s28, 4  ;;  %p676_p0 = pnand %p425_p13, %p646_p4  ;;  %s116_s29 = int_to_ptr.vmem [resolvable:$true] %s115_s29 }
  0x14   : > { %p403_p1 = scmp.ge.s32.totalorder %s587_s11, 1  ;;  %s104_s2 = scalar_lea.sflag [#allocation3], %s103_s22 }
  0x15   : > { %p481_p2 = pneg %p676_p0  ;;  %s492_s3 = scalar_lea.vmem %s116_s29, 512 }
  0x16   : > { %p493_p3 = scmp.ne.s32.totalorder %s116_s29, %s492_s3  ;;  %s589_s4 = smov [#allocation2]  }
  0x17   : > { %s497_s5 = sshll.u32 %s589_s4, 4  ;;  %s498_s5 = int_to_ptr.vmem [resolvable:$false] %s497_s5 }
  0x18   : > { %p495_p5 = pnand %p493_p3, %p481_p2  ;;  %s499_s12 = scalar_lea.vmem %s498_s5, 1024 }
  0x19   : > { %p500_p7 = scmp.lt.s32.totalorder %s116_s29, %s498_s5  ;;  %p501_p10 = scmp.lt.s32.totalorder %s499_s12, %s492_s3 }
  0x1a   : > { %p496_p6 = pneg %p495_p5 }
  0x1b   : > { %p502_p12 = por %p501_p10, %p500_p7 }
  0x1d   : > { %p503_p4 = pnand %p502_p12, %p496_p6 }
  0x1f   : > { %506 = shalt.err (!%p503_p4)
}
  0x20   : > { %s590_s13 = smov 128   ;;  %s591_s15 = smov 8  }
  0x21   : > { %420 = dma.hbm_to_vmem [thread:$0]  (!%p676_p0), %s114_s27, 512, %s116_s29, %s104_s2, %s590_s13, %s590_s13, %s591_s15  }
  0x22   : > { %p123_p13 = scmp.lt.s32.totalorder %s587_s11, 3 }
  0x24   : > { %p124_p2 = pnand %p403_p1, %p123_p13 }
  0x25   : > { %s689_s16 = sand.u32 (!%p124_p2), 1, %s571_s7  }
  0x26   : > { %127 = sbr.rel (%p124_p2) target bundleno = 99 (0x63), region = 24  ;;  %s404_s17 = sshll.u32 (!%p124_p2), %s689_s16, 5 }
  0x27   : > { %s130_s22 = scalar_lea.sflag (!%p124_p2), [#allocation3], %s689_s16  ;;  %s695_s23 = scalar_lea.vmem (!%p124_p2), [#allocation2], %s404_s17 }
  0x2b   : > { %558 = dma.done.wait (%p652_p8), %s130_s22, 512  }
  0x2c   : > { %560 = vsyncadd (%p652_p8), %s130_s22, 4294966784  ;;  %v152_v0 = vld [vmem:[%s695_s23 + $0x6] sm:$0xff]  ;;  %v153_v4 = vld [vmem:[%s695_s23 + $0xe] sm:$0xff]  ;;  %vm188_vm0 = vcmask 1042432   ;;  %vm201_vm1 = vcmask 1043456   ;;  %vm213_vm2 = vcmask 1044480  }
  0x2d   : > { %v155_v1 = vld [vmem:[%s695_s23 + $0x7] sm:$0xff]  ;;  %v156_v6 = vld [vmem:[%s695_s23 + $0xf] sm:$0xff]  ;;  %v157_v12 = vld [vmem:[%s695_s23 + $0x17] sm:$0x3f]  ;;  %s734_s18 = scalar_lea.vmem [#allocation5], %s404_s17  ;;  %s412_s24 = sshll.u32 %s579_s9, 9 }
  0x2e   : > { %v161_v2 = vld [vmem:[%s695_s23 + $0x8] sm:$0xff]  ;;  %v158_v3 = vadd.f32 %v155_v1, %v152_v0  ;;  %v162_v7 = vld [vmem:[%s695_s23 + $0x10] sm:$0xff]  ;;  %v159_v10 = vadd.f32 %v156_v6, %v153_v4  ;;  %v163_v15 = vld [vmem:[%s695_s23 + $0x18] sm:$0x3f]  ;;  %s311_s25 = sshll.u32 %s734_s18, 4  ;;  %s762_s28 = scalar_lea.hbm %s815_s1, %s412_s24  ;;  %s764_s25 = int_to_ptr.vmem [resolvable:$true] %s311_s25 }
  0x2f   : > { %v167_v5 = vld [vmem:[%s695_s23 + $0x9] sm:$0xff]  ;;  %v154_v11 = vld [vmem:[%s695_s23 + $0x16] sm:$0x3f]  ;;  %v716_v20 = vld [vmem:[%s695_s23] sm:$0x1]  ;;  %s297_s29 = scalar_lea.sflag [#allocation4], %s689_s16 }
  0x30   : > { %v164_v8 = vadd.f32 %v161_v2, %v158_v3  ;;  %v173_v9 = vld [vmem:[%s695_s23 + $0xa] sm:$0xff]  ;;  %v160_v14 = vadd.f32 %v157_v12, %v154_v11  ;;  %v169_v16 = vld [vmem:[%s695_s23 + $0x19] sm:$0x3f]  ;;  %v165_v18 = vadd.f32 %v162_v7, %v159_v10  ;;  %v187_v21 = vld [vmem:[%s695_s23] sm:$0x7]  ;;  %v196_v26 = vmul.f32 2.0, %v716_v20 }
  0x31   : > { %v168_v13 = vld [vmem:[%s695_s23 + $0x11] sm:$0xff]  ;;  %v175_v19 = vld [vmem:[%s695_s23 + $0x1a] sm:$0x3f]  ;;  %v200_v22 = vld [vmem:[%s695_s23] sm:$0xf]  ;;  %v189_v25 = vsel %vm188_vm0, %v187_v21, 0.0 }
  0x32   : > { %v170_v17 = vadd.f32 %v167_v5, %v164_v8  ;;  %v174_v23 = vld [vmem:[%s695_s23 + $0x12] sm:$0xff]  ;;  %v166_v24 = vadd.f32 %v163_v15, %v160_v14  ;;  %v202_v27 = vsel %vm201_vm1, %v200_v22, 0.0  ;;  %v212_v28 = vld [vmem:[%s695_s23] sm:$0x1f]  ;;  %v171_v30 = vadd.f32 %v168_v13, %v165_v18  ;;  %v263_v57 = vld [vmem:[%s695_s23 + $0x5] sm:$0x1f] }
  0x33   : > { %v190_v31 = vrot.slane %v189_v25, 4  ;;  %v203_v32 = vrot.slane %v202_v27, 4  ;;  %v223_v33 = vld [vmem:[%s695_s23 + $0x1] sm:$0x1f]  ;;  %v214_v36 = vsel %vm213_vm2, %v212_v28, 0.0  ;;  %v264_v5 = vsel %vm213_vm2, %v263_v57, 0.0 }
  0x34   : > { %v176_v29 = vadd.f32 %v173_v9, %v170_v17  ;;  %v233_v34 = vld [vmem:[%s695_s23 + $0x2] sm:$0x1f]  ;;  %v172_v35 = vadd.f32 %v169_v16, %v166_v24  ;;  %v224_v37 = vsel %vm213_vm2, %v223_v33, 0.0  ;;  %v177_v41 = vadd.f32 %v174_v23, %v171_v30  ;;  %v273_v28 = vld [vmem:[%s695_s23 + $0x1c] sm:$0xf]  ;;  %s507_s30 = scalar_lea.vmem %s764_s25, 512 }
  0x35   : > { %v234_v38 = vsel %vm213_vm2, %v233_v34, 0.0  ;;  %v243_v39 = vld [vmem:[%s695_s23 + $0x3] sm:$0x1f]  ;;  %v191_v42 = vadd.f32 %v190_v31, %v189_v25  ;;  %v204_v43 = vadd.f32 %v203_v32, %v202_v27  ;;  %v215_v45 = vrot.slane %v214_v36, 4  ;;  %p508_p8 = scmp.ne.s32.totalorder %s764_s25, %s507_s30  ;;  %s592_s9 = smov [#allocation5]  }
  0x36   : > { %v179_v40 = vmul.f32 0.2, %v176_v29  ;;  %v178_v44 = vadd.f32 %v175_v19, %v172_v35  ;;  %v225_v46 = vrot.slane %v224_v37, 4  ;;  %v235_v47 = vrot.slane %v234_v38, 4  ;;  %v253_v48 = vld [vmem:[%s695_s23 + $0x4] sm:$0x1f] }
  0x37   : > { %v180_v49 = vmul.f32 0.2, %v177_v41  ;;  %v192_v50 = vrot.slane %v191_v42, 2  ;;  %v205_v51 = vrot.slane %v204_v43, 2  ;;  %v244_v52 = vsel %vm213_vm2, %v243_v39, 0.0  ;;  %p509_p12 = pnand %p508_p8, %p656_p9  ;;  %s511_s2 = sshll.u32 %s592_s9, 4  ;;  %s512_s2 = int_to_ptr.vmem [resolvable:$false] %s511_s2 }
  0x38   : > { %182 = vst [vmem:[%s734_s18 + $0x8] sm:$0xff] %v179_v40  ;;  %v181_v53 = vmul.f32 0.2, %v178_v44  ;;  %v216_v54 = vadd.f32 %v215_v45, %v214_v36  ;;  %v226_v55 = vadd.f32 %v225_v46, %v224_v37  ;;  %v236_v56 = vadd.f32 %v235_v47, %v234_v38  ;;  %v284_v29 = vld [vmem:[%s695_s23 + $0x1d] sm:$0x7]  ;;  %s513_s3 = scalar_lea.vmem %s512_s2, 1024  ;;  %p514_p1 = scmp.lt.s32.totalorder %s764_s25, %s512_s2 }
  0x39   : > { %183 = vst [vmem:[%s734_s18 + $0x10] sm:$0xff] %v180_v49  ;;  %v193_v58 = vadd.f32 %v192_v50, %v191_v42  ;;  %v206_v59 = vadd.f32 %v205_v51, %v204_v43  ;;  %v245_v60 = vrot.slane %v244_v52, 4  ;;  %v254_v61 = vsel %vm213_vm2, %v253_v48, 0.0  ;;  %p510_p0 = pneg %p509_p12  ;;  %p515_p3 = scmp.lt.s32.totalorder %s513_s3, %s507_s30 }
  0x3a   : > { %184 = vst [vmem:[%s734_s18 + $0x18] sm:$0x3f] %v181_v53  ;;  %v217_v62 = vrot.slane %v216_v54, 2  ;;  %v227_v63 = vrot.slane %v226_v55, 2  ;;  %v237_v0 = vrot.slane %v236_v56, 2  ;;  %v255_v1 = vrot.slane %v254_v61, 4 }
  0x3b   : > { %v194_v2 = vrot.slane %v193_v58, 1  ;;  %v207_v3 = vrot.slane %v206_v59, 1  ;;  %v246_v4 = vadd.f32 %v245_v60, %v244_v52  ;;  %v265_v13 = vrot.slane %v264_v5, 4  ;;  %v186_v52 = vld [vmem:[%s695_s23 + $0x1f] sm:$0x1]  ;;  %p516_p5 = por %p515_p3, %p514_p1 }
  0x3c   : > { %v218_v6 = vadd.f32 %v217_v62, %v216_v54  ;;  %v228_v7 = vadd.f32 %v227_v63, %v226_v55  ;;  %v238_v8 = vadd.f32 %v237_v0, %v236_v56  ;;  %v256_v9 = vadd.f32 %v255_v1, %v254_v61 }
  0x3d   : > { %v195_v10 = vadd.f32 %v194_v2, %v193_v58  ;;  %v208_v11 = vadd.f32 %v207_v3, %v206_v59  ;;  %v247_v12 = vrot.slane %v246_v4, 2  ;;  %v266_v22 = vadd.f32 %v265_v13, %v264_v5  ;;  %p517_p6 = pnand %p516_p5, %p510_p0 }
  0x3e   : > { %v219_v14 = vrot.slane %v218_v6, 1  ;;  %v229_v15 = vrot.slane %v228_v7, 1  ;;  %v239_v16 = vrot.slane %v238_v8, 1  ;;  %v257_v17 = vrot.slane %v256_v9, 2 }
  0x3f   : > { %v197_v18 = vadd.f32 %v196_v26, %v195_v10  ;;  %v209_v19 = vadd.f32 %v208_v11, %v716_v20  ;;  %v248_v21 = vadd.f32 %v247_v12, %v246_v4  ;;  %v267_v33 = vrot.slane %v266_v22, 2 }
  0x40   : > { %v220_v23 = vadd.f32 %v219_v14, %v218_v6  ;;  %v230_v24 = vadd.f32 %v229_v15, %v228_v7  ;;  %v240_v25 = vadd.f32 %v239_v16, %v238_v8  ;;  %v258_v27 = vadd.f32 %v257_v17, %v256_v9 }
  0x41   : > { %v198_v30 = vmul.f32 0.2, %v197_v18  ;;  %v210_v31 = vmul.f32 0.2, %v209_v19  ;;  %v249_v32 = vrot.slane %v248_v21, 1  ;;  %v268_v37 = vadd.f32 %v267_v33, %v266_v22 }
  0x42   : > { %v221_v26 = vmul.f32 0.2, %v220_v23  ;;  %v231_v34 = vmul.f32 0.2, %v230_v24  ;;  %v241_v20 = vmul.f32 0.2, %v240_v25 }
  0x43   : > { %199 = vst [vmem:[%s734_s18] sm:$0x1] %v198_v30  ;;  %211 = vst [vmem:[%s734_s18 + $0x1] sm:$0x1] %v210_v31  ;;  %v250_v35 = vadd.f32 %v249_v32, %v248_v21  ;;  %v259_v36 = vrot.slane %v258_v27, 1  ;;  %v274_v38 = vsel %vm201_vm1, %v273_v28, 0.0  ;;  %v285_v40 = vsel %vm188_vm0, %v284_v29, 0.0 }
  0x44   : > { %222 = vst [vmem:[%s734_s18 + $0x2] sm:$0x1] %v221_v26  ;;  %232 = vst [vmem:[%s734_s18 + $0x3] sm:$0x1] %v231_v34  ;;  %v275_v39 = vrot.slane %v274_v38, 4  ;;  %v269_v43 = vrot.slane %v268_v37, 1 }
  0x45   : > { %242 = vst [vmem:[%s734_s18 + $0x4] sm:$0x1] %v241_v20  ;;  %v251_v41 = vmul.f32 0.2, %v250_v35  ;;  %v260_v42 = vadd.f32 %v259_v36, %v258_v27  ;;  %v286_v44 = vrot.slane %v285_v40, 4  ;;  %v292_v57 = vmul.f32 2.0, %v186_v52 }
  0x46   : > { %v276_v45 = vadd.f32 %v275_v39, %v274_v38  ;;  %v270_v47 = vadd.f32 %v269_v43, %v268_v37 }
  0x47   : > { %252 = vst [vmem:[%s734_s18 + $0x5] sm:$0x1] %v251_v41  ;;  %v261_v46 = vmul.f32 0.2, %v260_v42  ;;  %v287_v48 = vadd.f32 %v286_v44, %v285_v40 }
  0x48   : > { %v277_v49 = vrot.slane %v276_v45, 2  ;;  %v271_v50 = vmul.f32 0.2, %v270_v47 }
  0x49   : > { %262 = vst [vmem:[%s734_s18 + $0x6] sm:$0x1] %v261_v46  ;;  %v288_v51 = vrot.slane %v287_v48, 2 }
  0x4a   : > { %v278_v53 = vadd.f32 %v277_v49, %v276_v45  ;;  %272 = vst [vmem:[%s734_s18 + $0x7] sm:$0x1] %v271_v50 }
  0x4b   : > { %v289_v54 = vadd.f32 %v288_v51, %v287_v48 }
  0x4c   : > { %v279_v55 = vrot.slane %v278_v53, 1 }
  0x4d   : > { %v290_v56 = vrot.slane %v289_v54, 1 }
  0x4e   : > { %v280_v58 = vadd.f32 %v279_v55, %v278_v53 }
  0x4f   : > { %v291_v59 = vadd.f32 %v290_v56, %v289_v54 }
  0x50   : > { %v281_v60 = vadd.f32 %v280_v58, %v186_v52 }
  0x51   : > { %v293_v61 = vadd.f32 %v292_v57, %v291_v59 }
  0x52   : > { %v282_v62 = vmul.f32 0.2, %v281_v60 }
  0x53   : > { %v294_v63 = vmul.f32 0.2, %v293_v61 }
  0x54   : > { %283 = vst [vmem:[%s734_s18 + $0x1e] sm:$0x1] %v282_v62 }
  0x55   : > { %295 = vst [vmem:[%s734_s18 + $0x1f] sm:$0x1] %v294_v63 }
  0x56   : > { %520 = shalt.err (!%p517_p6)
}
  0x57   : > { %s521_s4 = scalar_lea.hbm %s762_s28, 512  ;;  %s525_s13 = scalar_lea.hbm %s815_s1, 1024 }
  0x58   : > { %p522_p7 = scmp.ne.s32.totalorder %s762_s28, %s521_s4  ;;  %p526_p13 = scmp.lt.s32.totalorder %s762_s28, %s815_s1 }
  0x59   : > { %p527_p2 = scmp.lt.s32.totalorder %s525_s13, %s521_s4 }
  0x5a   : > { %p523_p10 = pnand %p522_p7, %p656_p9 }
  0x5b   : > { %p528_p8 = por %p527_p2, %p526_p13 }
  0x5c   : > { %p524_p4 = pneg %p523_p10 }
  0x5e   : > { %p529_p12 = pnand %p528_p8, %p524_p4 }
  0x60   : > { %532 = shalt.err (!%p529_p12)
}
  0x61   : > { %s593_s22 = smov 128   ;;  %s594_s23 = smov 8  }
  0x62   : > { %415 = dma.vmem_to_hbm [thread:$0]  (%p656_p9), %s764_s25, 512, %s762_s28, %s297_s29, %s593_s22, %s593_s22, %s594_s23  }
  0x63 PF: > { %s326_s18 = sand.u32 1, %s567_s6   ;;  %p821_p0 = scmp.ge.s32.totalorder %s587_s11, 2 }
  0x64   : > { %s327_s24 = scalar_lea.sflag [#allocation4], %s326_s18 }
  0x65   : > { %p422_p1 = pnand %p821_p0, %p663_p11 }
  0x67   : > { %p423_p3 = pneg %p422_p1 }
  0x69   : > { %562 = dma.done.wait (%p423_p3), %s327_s24, 512  }
  0x6a   : > { %564 = vsyncadd (%p423_p3), %s327_s24, 4294966784  ;;  %s17_s11 = sadd.s32 1, %s587_s11   ;;  %s822_s6 = smov %s571_s7 }
  0x6b   : > { %p14_p5 = scmp.ge.s32.totalorder %s17_s11, 4   ;;  %s823_s7 = smov %s575_s8 }
  0x6c   : > { %s824_s8 = smov %s661_s20  ;;  %s825_s9 = smov %s583_s10 }
  0x6d   : > { %s826_s10 = smov %s828_s14  ;;  %16 = sbr.rel (!%p14_p5) target bundleno = 6 (0x6), region = 69 }
  0x72   :  { %332 = vsyncpa [#allocation3], 1 }
  0x73   :  { %334 = vsyncpa [#allocation3 + $0x1], 1 }
  0x74   :  { %335 = vsyncpa [#allocation4], 1 }
  0x75   :  { %337 = vsyncpa [#allocation4 + $0x1], 1 }

</bundles_post_ra>
